<compile_context>
chip_gen: v6e
topology: v6e:2x2x1
jax: 0.10.0
libtpu: 0.0.40
codegen_flags: <defaults>
</compile_context>

<pallas_src>
import math

import numpy as np
import jax
import jax.numpy as jnp
from jax.experimental import pallas as pl
from jax.experimental.pallas import tpu as pltpu


# ---------------------------------------------------------------------------
# Interpolation weight matrices (host glue, built at trace time).
#   * nearest : src = floor(o * n_in / n_out)
#   * bilinear, align_corners=False : src = (o + 0.5) * n_in/n_out - 0.5,
#     clamped at 0, linear blend, border replicated
#   * bicubic, align_corners=False  : cubic convolution, a = -0.75, border
#     replicated
# ---------------------------------------------------------------------------
def _interp_matrix(n_in: int, n_out: int, method: str) -> np.ndarray:
    M = np.zeros((n_out, n_in), dtype=np.float32)
    scale = n_in / n_out
    if method == "nearest":
        for o in range(n_out):
            src = int(np.floor(o * scale))
            M[o, min(src, n_in - 1)] = 1.0
    elif method == "linear":
        for o in range(n_out):
            src = max((o + 0.5) * scale - 0.5, 0.0)
            i0 = min(int(np.floor(src)), n_in - 1)
            i1 = min(i0 + 1, n_in - 1)
            lam = src - i0
            M[o, i0] += 1.0 - lam
            M[o, i1] += lam
    elif method == "bicubic":
        a = -0.75

        def cubic(t):
            t = abs(t)
            if t <= 1.0:
                return (a + 2.0) * t ** 3 - (a + 3.0) * t ** 2 + 1.0
            if t < 2.0:
                return a * t ** 3 - 5.0 * a * t ** 2 + 8.0 * a * t - 4.0 * a
            return 0.0

        for o in range(n_out):
            src = (o + 0.5) * scale - 0.5
            i0 = int(np.floor(src))
            lam = src - i0
            for k in range(-1, 3):
                idx = min(max(i0 + k, 0), n_in - 1)
                M[o, idx] += cubic(k - lam)
    else:
        raise ValueError(f"No support for upscaling method: {method}")
    return M


# ---------------------------------------------------------------------------
# Kernels
# ---------------------------------------------------------------------------
def _upscale_kernel_2d(wy_ref, wxt_ref, x_ref, o_ref):
    """Preferred: both stages as single 2-D MXU matmuls.

    wy_ref : (H_out, H)      row-interp weights (grid-invariant)
    wxt_ref: (W, W_out)      column-interp weights, pre-transposed
    x_ref  : (H, tb*W)       tb images, batch folded into the lane axis
    o_ref  : (H_out, tb*W_out)
    """
    h_out, _ = wy_ref.shape
    w, w_out = wxt_ref.shape
    tb = x_ref.shape[1] // w

    x = x_ref[...]
    if x.dtype != wy_ref.dtype:
        x = x.astype(wy_ref.dtype)

    # Stage 1: row (H) interpolation — one 2-D matmul, M=H_out, K=H, N=tb*W.
    t1 = jnp.dot(wy_ref[...], x, preferred_element_type=jnp.float32)
    # Contiguous relayout (H_out, tb*W) -> (H_out*tb, W): puts W on the
    # contraction axis for stage 2. Intermediate stays in f32 (PyTorch opmath).
    t1 = t1.reshape(h_out * tb, w)
    if wxt_ref.dtype != jnp.float32:
        t1 = t1.astype(wxt_ref.dtype)
    # Stage 2: column (W) interpolation — one 2-D matmul, M=H_out*tb, K=W, N=W_out.
    out = jnp.dot(t1, wxt_ref[...], preferred_element_type=jnp.float32)
    o_ref[...] = out.reshape(h_out, tb * w_out).astype(o_ref.dtype)


def _upscale_kernel_batched(wy_ref, wxt_ref, x_ref, o_ref):
    """Fallback (previously validated lowering).

    x_ref: (tb, H, W), o_ref: (tb, H_out, W_out).
    """
    tb, h, w = x_ref.shape
    h_out = wy_ref.shape[0]
    w_out = wxt_ref.shape[1]

    x = x_ref[...]
    if x.dtype != wy_ref.dtype:
        x = x.astype(wy_ref.dtype)

    col = jnp.dot(x.reshape(tb * h, w), wxt_ref[...],
                  preferred_element_type=jnp.float32)
    col = col.reshape(tb, h, w_out)            # keep f32 intermediate
    if wy_ref.dtype != jnp.float32:
        col = col.astype(wy_ref.dtype)
    wy_b = jnp.broadcast_to(wy_ref[...], (tb, h_out, h))
    out = jnp.einsum("boh,bhw->bow", wy_b, col,
                     preferred_element_type=jnp.float32)
    o_ref[...] = out.astype(o_ref.dtype)


# ---------------------------------------------------------------------------
# VMEM-aware tiling
# ---------------------------------------------------------------------------
def _vmem_capacity_bytes() -> int:
    try:
        return int(pltpu.get_tpu_info().vmem_capacity_bytes)
    except Exception:
        return 64 << 20  # conservative default: v7x per-TensorCore VMEM


def _per_image_bytes(H, W, H_out, W_out, io_item) -> int:
    # Double-buffered in/out blocks + f32 intermediates (incl. possible casts).
    return (2 * (H * W + H_out * W_out) * io_item
            + (H * W + H_out * W + H_out * W_out) * 4)


def _choose_tb(nc, H, W, H_out, W_out, io_item, w_bytes, budget) -> int:
    per = _per_image_bytes(H, W, H_out, W_out, io_item)
    headroom = 4 << 20
    avail = budget - w_bytes - headroom
    tb_vmem = max(1, int(avail // per)) if avail >= per else 1
    tb_steps = max(1, nc // 4)          # keep >=4 grid steps when batch allows
    tb = max(1, min(tb_vmem, tb_steps, nc))

    # Lane alignment for the 2-D presentation: x / out block last dims
    # (tb*W, tb*W_out) must be multiples of 128 unless the block spans the
    # whole (padded) batch axis.
    g = math.lcm(128 // math.gcd(W, 128), 128 // math.gcd(W_out, 128))
    if g > 1 and tb % g:
        if tb >= g:
            tb = (tb // g) * g
        elif nc <= g or nc * per + w_bytes + headroom <= budget:
            tb = nc          # one full-extent block (grid of 1) — no padding
        else:
            tb = g           # pad the batch up to a multiple of g
    return int(tb)


def _vmem_limit_bytes(tb, H, W, H_out, W_out, io_item, w_bytes, cap) -> int:
    est = tb * _per_image_bytes(H, W, H_out, W_out, io_item) + w_bytes + (6 << 20)
    return int(min(max(est, 32 << 20), cap))


# ---------------------------------------------------------------------------
# Wrapper
# ---------------------------------------------------------------------------
def upscaling_forward(in_frame: jnp.ndarray, scale_factor: float,
                      method: str = "linear", *,
                      use_bf16_matmul: bool = False) -> jnp.ndarray:
    """Equivalent of UpscalingMethod(method=...)(in_frame, scale_factor) for
    4-D NCHW inputs with the interpolation-based methods."""
    assert in_frame.ndim == 4, "only 4-D (NCHW) inputs are implemented"
    N, C, H, W = map(int, in_frame.shape)
    H_out, W_out = int(H * scale_factor), int(W * scale_factor)

    out_dtype = jnp.dtype(in_frame.dtype)
    assert jnp.issubdtype(out_dtype, jnp.floating), \
        "interpolation upscaling requires a floating input dtype"

    # MXU operand dtype (f32 accumulation regardless).
    if use_bf16_matmul and out_dtype == jnp.dtype(jnp.float32):
        w_dtype = jnp.dtype(jnp.bfloat16)
    elif out_dtype in (jnp.dtype(jnp.bfloat16), jnp.dtype(jnp.float16)):
        w_dtype = out_dtype
    else:
        w_dtype = jnp.dtype(jnp.float32)

    wy = jnp.asarray(_interp_matrix(H, H_out, method), dtype=w_dtype)            # (H_out, H)
    wxt = jnp.asarray(_interp_matrix(W, W_out, method).T.copy(), dtype=w_dtype)  # (W, W_out)

    nc = N * C
    io_item = out_dtype.itemsize
    # Conservative: count weights double-buffered even though we request
    # single buffering (pl.Buffered(1)) below.
    w_bytes = 2 * (H_out * H + W * W_out) * w_dtype.itemsize

    cap = _vmem_capacity_bytes()
    budget = max(24 << 20, min(cap - (24 << 20), 100 << 20))   # ~40 MiB v7x, ~100 MiB v5e/v6e
    tb = _choose_tb(nc, H, W, H_out, W_out, io_item, w_bytes, budget)
    nc_pad = -(-nc // tb) * tb
    grid = (nc_pad // tb,)
    vmem_limit = _vmem_limit_bytes(tb, H, W, H_out, W_out, io_item, w_bytes, cap)
    cparams = dict(dimension_semantics=("parallel",), vmem_limit_bytes=vmem_limit)

    x3 = in_frame.reshape(nc, H, W)                 # keep native dtype — no f32 upcast
    if nc_pad != nc:
        x3 = jnp.concatenate(
            [x3, jnp.zeros((nc_pad - nc, H, W), out_dtype)], axis=0)

    def run_2d(weight_mode):
        wkw = {} if weight_mode is None else {"pipeline_mode": weight_mode}
        # Lane-dense presentation: batch folded into the last (lane) axis.
        x2d = jnp.transpose(x3, (1, 0, 2)).reshape(H, nc_pad * W)
        out2d = pl.pallas_call(
            _upscale_kernel_2d,
            out_shape=jax.ShapeDtypeStruct((H_out, nc_pad * W_out), out_dtype),
            grid_spec=pltpu.PrefetchScalarGridSpec(
                num_scalar_prefetch=0,
                grid=grid,
                in_specs=[
                    pl.BlockSpec((H_out, H), lambda i: (0, 0), **wkw),
                    pl.BlockSpec((W, W_out), lambda i: (0, 0), **wkw),
                    pl.BlockSpec((H, tb * W), lambda i: (0, i)),
                ],
                out_specs=pl.BlockSpec((H_out, tb * W_out), lambda i: (0, i)),
            ),
            compiler_params=pltpu.CompilerParams(**cparams),
        )(wy, wxt, x2d)
        out = out2d.reshape(H_out, nc_pad, W_out)[:, :nc, :]
        return jnp.transpose(out, (1, 0, 2)).reshape(N, C, H_out, W_out)

    def run_batched(weight_mode):
        wkw = {} if weight_mode is None else {"pipeline_mode": weight_mode}
        out3 = pl.pallas_call(
            _upscale_kernel_batched,
            out_shape=jax.ShapeDtypeStruct((nc_pad, H_out, W_out), out_dtype),
            grid_spec=pltpu.PrefetchScalarGridSpec(
                num_scalar_prefetch=0,
                grid=grid,
                in_specs=[
                    pl.BlockSpec((H_out, H), lambda i: (0, 0), **wkw),
                    pl.BlockSpec((W, W_out), lambda i: (0, 0), **wkw),
                    pl.BlockSpec((tb, H, W), lambda i: (i, 0, 0)),
                ],
                out_specs=pl.BlockSpec((tb, H_out, W_out), lambda i: (i, 0, 0)),
            ),
            compiler_params=pltpu.CompilerParams(**cparams),
        )(wy, wxt, x3)
        return out3[:nc].reshape(N, C, H_out, W_out)

    # Preferred lowering first (single-buffered weights, 2-D stacked matmuls);
    # gracefully fall back if this JAX/Mosaic version rejects pipeline_mode or
    # the mid-stage relayout, so the call always compiles and runs.
    attempts = (
        lambda: run_2d(pl.Buffered(1)),
        lambda: run_2d(None),
        lambda: run_batched(pl.Buffered(1)),
        lambda: run_batched(None),
    )
    last_err = None
    for attempt in attempts:
        try:
            return attempt()
        except Exception as e:   # try the next lowering strategy
            last_err = e
    raise last_err


# ---------------------------------------------------------------------------
# Demo / validation
# ---------------------------------------------------------------------------
if __name__ == "__main__":
    key = jax.random.PRNGKey(0)

    def reference(x_np, sf, method):
        n, c, h, w = x_np.shape
        wy_np = _interp_matrix(h, int(h * sf), method)
        wx_np = _interp_matrix(w, int(w * sf), method)
        return np.einsum("oh,nchw,pw->ncop", wy_np,
                         x_np.astype(np.float64), wx_np)

    cases = [
        ((2, 4, 16, 16), 2.0),    # tiny frame: single full-extent block
        ((3, 3, 16, 128), 2.0),   # lane-aligned frame: multi-step grid + batch padding
    ]
    for idx, (shape, sf) in enumerate(cases):
        x = jax.random.normal(jax.random.fold_in(key, idx), shape, dtype=jnp.float32)
        x_np = np.asarray(x)
        N, C, H, W = shape
        H_out, W_out = int(H * sf), int(W * sf)
        for m in ("linear", "nearest", "bicubic"):
            got = np.asarray(jax.block_until_ready(
                upscaling_forward(x, sf, method=m)))
            assert got.shape == (N, C, H_out, W_out)
            np.testing.assert_allclose(got, reference(x_np, sf, m),
                                       rtol=1e-2, atol=1e-2)

    # Semantic check: bilinear (align_corners=False) matches jax.image.resize
    # half-pixel-center linear resize for pure upsampling.
    x = jax.random.normal(key, (2, 4, 16, 16), dtype=jnp.float32)
    up = jax.block_until_ready(upscaling_forward(x, 2.0, method="linear"))
    ref_lin = jax.image.resize(x, (2, 4, 32, 32), method="linear")
    np.testing.assert_allclose(np.asarray(up), np.asarray(ref_lin),
                               rtol=1e-2, atol=1e-2)

    # Optional bf16-MXU fast path (v6e/v7x) stays within tolerance of f32.
    up_bf16 = jax.block_until_ready(
        upscaling_forward(x, 2.0, method="bicubic", use_bf16_matmul=True))
    up_f32 = jax.block_until_ready(upscaling_forward(x, 2.0, method="bicubic"))
    np.testing.assert_allclose(np.asarray(up_bf16), np.asarray(up_f32),
                               rtol=2e-2, atol=5e-2)

    print("KERNEL_OK")
</pallas_src>

<mosaic_0001>
module attributes {stable_mosaic.version = 11 : i64} {
  func.func @_upscale_kernel_2d(%arg0: i32, %arg1: memref<32x16xf32, #tpu.memory_space<vmem>>, %arg2: memref<16x32xf32, #tpu.memory_space<vmem>>, %arg3: memref<16x128xf32, #tpu.memory_space<vmem>>, %arg4: memref<32x256xf32, #tpu.memory_space<vmem>>) attributes {dimension_semantics = [#tpu.dimension_semantics<parallel>], iteration_bounds = array<i64: 1>, scalar_prefetch = 0 : i64, scratch_operands = 0 : i64, tpu.core_type = #tpu.core_type<tc>, window_params = [{pipeline_mode = #tpu.pipeline_mode<synchronous>, transform_indices = @transform_0, window_bounds = array<i64: 32, 16>}, {pipeline_mode = #tpu.pipeline_mode<synchronous>, transform_indices = @transform_1, window_bounds = array<i64: 16, 32>}, {transform_indices = @transform_2, window_bounds = array<i64: 16, 128>}, {transform_indices = @transform_3, window_bounds = array<i64: 32, 256>}]} {
    %c0 = arith.constant 0 : index
    %c0_0 = arith.constant 0 : index
    %0 = vector.load %arg3[%c0, %c0_0] : memref<16x128xf32, #tpu.memory_space<vmem>>, vector<16x128xf32>
    %c0_1 = arith.constant 0 : index
    %c0_2 = arith.constant 0 : index
    %1 = vector.load %arg1[%c0_1, %c0_2] : memref<32x16xf32, #tpu.memory_space<vmem>>, vector<32x16xf32>
    %cst = arith.constant dense<0.000000e+00> : vector<32x128xf32>
    %2 = tpu.matmul %1, %0, %cst {dimension_numbers = #tpu.dot_dimension_numbers<[1], [0], [0], [1], [0, 0, 1, 1], [], []>} : vector<32x16xf32>, vector<16x128xf32>, vector<32x128xf32> -> vector<32x128xf32>
    %3 = vector.shape_cast %2 : vector<32x128xf32> to vector<256x16xf32>
    %c0_3 = arith.constant 0 : index
    %c0_4 = arith.constant 0 : index
    %4 = vector.load %arg2[%c0_3, %c0_4] : memref<16x32xf32, #tpu.memory_space<vmem>>, vector<16x32xf32>
    %cst_5 = arith.constant dense<0.000000e+00> : vector<256x32xf32>
    %5 = tpu.matmul %3, %4, %cst_5 {dimension_numbers = #tpu.dot_dimension_numbers<[1], [0], [0], [1], [0, 0, 1, 1], [], []>} : vector<256x16xf32>, vector<16x32xf32>, vector<256x32xf32> -> vector<256x32xf32>
    %6 = vector.shape_cast %5 : vector<256x32xf32> to vector<32x256xf32>
    %c0_6 = arith.constant 0 : index
    %c0_7 = arith.constant 0 : index
    %7 = vector.load %arg4[%c0_6, %c0_7] : memref<32x256xf32, #tpu.memory_space<vmem>>, vector<32x256xf32>
    tpu.vector_store %arg4[%c0_6, %c0_7], %6 {strides = array<i32>} : memref<32x256xf32, #tpu.memory_space<vmem>>, vector<32x256xf32>,
    return
  }
  func.func @transform_0(%arg0: i32) -> (i32, i32) {
    %c0_i32 = arith.constant 0 : i32
    %c0_i32_0 = arith.constant 0 : i32
    %c0_i32_1 = arith.constant 0 : i32
    return %c0_i32, %c0_i32_0 : i32, i32
  }
  func.func @transform_1(%arg0: i32) -> (i32, i32) {
    %c0_i32 = arith.constant 0 : i32
    %c0_i32_0 = arith.constant 0 : i32
    %c0_i32_1 = arith.constant 0 : i32
    return %c0_i32, %c0_i32_0 : i32, i32
  }
  func.func @transform_2(%arg0: i32) -> (i32, i32) {
    %c0_i32 = arith.constant 0 : i32
    %c0_i32_0 = arith.constant 0 : i32
    return %c0_i32, %arg0 : i32, i32
  }
  func.func @transform_3(%arg0: i32) -> (i32, i32) {
    %c0_i32 = arith.constant 0 : i32
    %c0_i32_0 = arith.constant 0 : i32
    return %c0_i32, %arg0 : i32, i32
  }
}

module attributes {stable_mosaic.version = 11 : i64} {
  func.func @_upscale_kernel_2d(%arg0: i32, %arg1: memref<32x16xf32, #tpu.memory_space<vmem>>, %arg2: memref<16x32xf32, #tpu.memory_space<vmem>>, %arg3: memref<16x128xf32, #tpu.memory_space<vmem>>, %arg4: memref<32x256xf32, #tpu.memory_space<vmem>>) attributes {dimension_semantics = [#tpu.dimension_semantics<parallel>], iteration_bounds = array<i64: 1>, scalar_prefetch = 0 : i64, scratch_operands = 0 : i64, tpu.core_type = #tpu.core_type<tc>, window_params = [{pipeline_mode = #tpu.pipeline_mode<synchronous>, transform_indices = @transform_0, window_bounds = array<i64: 32, 16>}, {pipeline_mode = #tpu.pipeline_mode<synchronous>, transform_indices = @transform_1, window_bounds = array<i64: 16, 32>}, {transform_indices = @transform_2, window_bounds = array<i64: 16, 128>}, {transform_indices = @transform_3, window_bounds = array<i64: 32, 256>}]} {
    %c0 = arith.constant 0 : index
    %c0_0 = arith.constant 0 : index
    %0 = vector.load %arg3[%c0, %c0_0] : memref<16x128xf32, #tpu.memory_space<vmem>>, vector<16x128xf32>
    %c0_1 = arith.constant 0 : index
    %c0_2 = arith.constant 0 : index
    %1 = vector.load %arg1[%c0_1, %c0_2] : memref<32x16xf32, #tpu.memory_space<vmem>>, vector<32x16xf32>
    %cst = arith.constant dense<0.000000e+00> : vector<32x128xf32>
    %2 = tpu.matmul %1, %0, %cst {dimension_numbers = #tpu.dot_dimension_numbers<[1], [0], [0], [1], [0, 0, 1, 1], [], []>} : vector<32x16xf32>, vector<16x128xf32>, vector<32x128xf32> -> vector<32x128xf32>
    %3 = vector.shape_cast %2 : vector<32x128xf32> to vector<256x16xf32>
    %c0_3 = arith.constant 0 : index
    %c0_4 = arith.constant 0 : index
    %4 = vector.load %arg2[%c0_3, %c0_4] : memref<16x32xf32, #tpu.memory_space<vmem>>, vector<16x32xf32>
    %cst_5 = arith.constant dense<0.000000e+00> : vector<256x32xf32>
    %5 = tpu.matmul %3, %4, %cst_5 {dimension_numbers = #tpu.dot_dimension_numbers<[1], [0], [0], [1], [0, 0, 1, 1], [], []>} : vector<256x16xf32>, vector<16x32xf32>, vector<256x32xf32> -> vector<256x32xf32>
    %6 = vector.shape_cast %5 : vector<256x32xf32> to vector<32x256xf32>
    %c0_6 = arith.constant 0 : index
    %c0_7 = arith.constant 0 : index
    %7 = vector.load %arg4[%c0_6, %c0_7] : memref<32x256xf32, #tpu.memory_space<vmem>>, vector<32x256xf32>
    tpu.vector_store %arg4[%c0_6, %c0_7], %6 {strides = array<i32>} : memref<32x256xf32, #tpu.memory_space<vmem>>, vector<32x256xf32>,
    return
  }
  func.func @transform_0(%arg0: i32) -> (i32, i32) {
    %c0_i32 = arith.constant 0 : i32
    %c0_i32_0 = arith.constant 0 : i32
    %c0_i32_1 = arith.constant 0 : i32
    return %c0_i32, %c0_i32_0 : i32, i32
  }
  func.func @transform_1(%arg0: i32) -> (i32, i32) {
    %c0_i32 = arith.constant 0 : i32
    %c0_i32_0 = arith.constant 0 : i32
    %c0_i32_1 = arith.constant 0 : i32
    return %c0_i32, %c0_i32_0 : i32, i32
  }
  func.func @transform_2(%arg0: i32) -> (i32, i32) {
    %c0_i32 = arith.constant 0 : i32
    %c0_i32_0 = arith.constant 0 : i32
    return %c0_i32, %arg0 : i32, i32
  }
  func.func @transform_3(%arg0: i32) -> (i32, i32) {
    %c0_i32 = arith.constant 0 : i32
    %c0_i32_0 = arith.constant 0 : i32
    return %c0_i32, %arg0 : i32, i32
  }
}

module attributes {stable_mosaic.version = 11 : i64} {
  func.func @_upscale_kernel_batched(%arg0: i32, %arg1: memref<32x16xf32, #tpu.memory_space<vmem>>, %arg2: memref<16x32xf32, #tpu.memory_space<vmem>>, %arg3: memref<8x16x16xf32, #tpu.memory_space<vmem>>, %arg4: memref<8x32x32xf32, #tpu.memory_space<vmem>>) attributes {dimension_semantics = [#tpu.dimension_semantics<parallel>], iteration_bounds = array<i64: 1>, scalar_prefetch = 0 : i64, scratch_operands = 0 : i64, tpu.core_type = #tpu.core_type<tc>, window_params = [{pipeline_mode = #tpu.pipeline_mode<synchronous>, transform_indices = @transform_0, window_bounds = array<i64: 32, 16>}, {pipeline_mode = #tpu.pipeline_mode<synchronous>, transform_indices = @transform_1, window_bounds = array<i64: 16, 32>}, {transform_indices = @transform_2, window_bounds = array<i64: 8, 16, 16>}, {transform_indices = @transform_3, window_bounds = array<i64: 8, 32, 32>}]} {
    %c0 = arith.constant 0 : index
    %c0_0 = arith.constant 0 : index
    %c0_1 = arith.constant 0 : index
    %0 = vector.load %arg3[%c0, %c0_0, %c0_1] : memref<8x16x16xf32, #tpu.memory_space<vmem>>, vector<8x16x16xf32>
    %1 = vector.shape_cast %0 : vector<8x16x16xf32> to vector<128x16xf32>
    %c0_2 = arith.constant 0 : index
    %c0_3 = arith.constant 0 : index
    %2 = vector.load %arg2[%c0_2, %c0_3] : memref<16x32xf32, #tpu.memory_space<vmem>>, vector<16x32xf32>
    %cst = arith.constant dense<0.000000e+00> : vector<128x32xf32>
    %3 = tpu.matmul %1, %2, %cst {dimension_numbers = #tpu.dot_dimension_numbers<[1], [0], [0], [1], [0, 0, 1, 1], [], []>} : vector<128x16xf32>, vector<16x32xf32>, vector<128x32xf32> -> vector<128x32xf32>
    %4 = vector.shape_cast %3 : vector<128x32xf32> to vector<8x16x32xf32>
    %c0_4 = arith.constant 0 : index
    %c0_5 = arith.constant 0 : index
    %5 = vector.load %arg1[%c0_4, %c0_5] : memref<32x16xf32, #tpu.memory_space<vmem>>, vector<32x16xf32>
    %6 = vector.shape_cast %5 : vector<32x16xf32> to vector<1x32x16xf32>
    %7 = vector.broadcast %6 : vector<1x32x16xf32> to vector<8x32x16xf32>
    "tpu.trace_start"() <{level = 10 : i32, message = "boh,bhw->bow"}> : () -> ()
    %cst_6 = arith.constant dense<0.000000e+00> : vector<8x32x32xf32>
    %8 = tpu.matmul %7, %4, %cst_6 {dimension_numbers = #tpu.dot_dimension_numbers<[2], [1], [1], [2], [0, 0, 0, 1, 1, 2], [0], [0]>} : vector<8x32x16xf32>, vector<8x16x32xf32>, vector<8x32x32xf32> -> vector<8x32x32xf32>
    "tpu.trace_stop"() : () -> ()
    %c0_7 = arith.constant 0 : index
    %c0_8 = arith.constant 0 : index
    %c0_9 = arith.constant 0 : index
    %9 = vector.load %arg4[%c0_7, %c0_8, %c0_9] : memref<8x32x32xf32, #tpu.memory_space<vmem>>, vector<8x32x32xf32>
    tpu.vector_store %arg4[%c0_7, %c0_8, %c0_9], %8 {strides = array<i32>} : memref<8x32x32xf32, #tpu.memory_space<vmem>>, vector<8x32x32xf32>,
    return
  }
  func.func @transform_0(%arg0: i32) -> (i32, i32) {
    %c0_i32 = arith.constant 0 : i32
    %c0_i32_0 = arith.constant 0 : i32
    %c0_i32_1 = arith.constant 0 : i32
    return %c0_i32, %c0_i32_0 : i32, i32
  }
  func.func @transform_1(%arg0: i32) -> (i32, i32) {
    %c0_i32 = arith.constant 0 : i32
    %c0_i32_0 = arith.constant 0 : i32
    %c0_i32_1 = arith.constant 0 : i32
    return %c0_i32, %c0_i32_0 : i32, i32
  }
  func.func @transform_2(%arg0: i32) -> (i32, i32, i32) {
    %c0_i32 = arith.constant 0 : i32
    %c0_i32_0 = arith.constant 0 : i32
    %c0_i32_1 = arith.constant 0 : i32
    return %arg0, %c0_i32, %c0_i32_0 : i32, i32, i32
  }
  func.func @transform_3(%arg0: i32) -> (i32, i32, i32) {
    %c0_i32 = arith.constant 0 : i32
    %c0_i32_0 = arith.constant 0 : i32
    %c0_i32_1 = arith.constant 0 : i32
    return %arg0, %c0_i32, %c0_i32_0 : i32, i32, i32
  }
}

module attributes {stable_mosaic.version = 11 : i64} {
  func.func @_upscale_kernel_batched(%arg0: i32, %arg1: memref<32x16xf32, #tpu.memory_space<vmem>>, %arg2: memref<16x32xf32, #tpu.memory_space<vmem>>, %arg3: memref<8x16x16xf32, #tpu.memory_space<vmem>>, %arg4: memref<8x32x32xf32, #tpu.memory_space<vmem>>) attributes {dimension_semantics = [#tpu.dimension_semantics<parallel>], iteration_bounds = array<i64: 1>, scalar_prefetch = 0 : i64, scratch_operands = 0 : i64, tpu.core_type = #tpu.core_type<tc>, window_params = [{pipeline_mode = #tpu.pipeline_mode<synchronous>, transform_indices = @transform_0, window_bounds = array<i64: 32, 16>}, {pipeline_mode = #tpu.pipeline_mode<synchronous>, transform_indices = @transform_1, window_bounds = array<i64: 16, 32>}, {transform_indices = @transform_2, window_bounds = array<i64: 8, 16, 16>}, {transform_indices = @transform_3, window_bounds = array<i64: 8, 32, 32>}]} {
    %c0 = arith.constant 0 : index
    %c0_0 = arith.constant 0 : index
    %c0_1 = arith.constant 0 : index
    %0 = vector.load %arg3[%c0, %c0_0, %c0_1] : memref<8x16x16xf32, #tpu.memory_space<vmem>>, vector<8x16x16xf32>
    %1 = vector.shape_cast %0 : vector<8x16x16xf32> to vector<128x16xf32>
    %c0_2 = arith.constant 0 : index
    %c0_3 = arith.constant 0 : index
    %2 = vector.load %arg2[%c0_2, %c0_3] : memref<16x32xf32, #tpu.memory_space<vmem>>, vector<16x32xf32>
    %cst = arith.constant dense<0.000000e+00> : vector<128x32xf32>
    %3 = tpu.matmul %1, %2, %cst {dimension_numbers = #tpu.dot_dimension_numbers<[1], [0], [0], [1], [0, 0, 1, 1], [], []>} : vector<128x16xf32>, vector<16x32xf32>, vector<128x32xf32> -> vector<128x32xf32>
    %4 = vector.shape_cast %3 : vector<128x32xf32> to vector<8x16x32xf32>
    %c0_4 = arith.constant 0 : index
    %c0_5 = arith.constant 0 : index
    %5 = vector.load %arg1[%c0_4, %c0_5] : memref<32x16xf32, #tpu.memory_space<vmem>>, vector<32x16xf32>
    %6 = vector.shape_cast %5 : vector<32x16xf32> to vector<1x32x16xf32>
    %7 = vector.broadcast %6 : vector<1x32x16xf32> to vector<8x32x16xf32>
    "tpu.trace_start"() <{level = 10 : i32, message = "boh,bhw->bow"}> : () -> ()
    %cst_6 = arith.constant dense<0.000000e+00> : vector<8x32x32xf32>
    %8 = tpu.matmul %7, %4, %cst_6 {dimension_numbers = #tpu.dot_dimension_numbers<[2], [1], [1], [2], [0, 0, 0, 1, 1, 2], [0], [0]>} : vector<8x32x16xf32>, vector<8x16x32xf32>, vector<8x32x32xf32> -> vector<8x32x32xf32>
    "tpu.trace_stop"() : () -> ()
    %c0_7 = arith.constant 0 : index
    %c0_8 = arith.constant 0 : index
    %c0_9 = arith.constant 0 : index
    %9 = vector.load %arg4[%c0_7, %c0_8, %c0_9] : memref<8x32x32xf32, #tpu.memory_space<vmem>>, vector<8x32x32xf32>
    tpu.vector_store %arg4[%c0_7, %c0_8, %c0_9], %8 {strides = array<i32>} : memref<8x32x32xf32, #tpu.memory_space<vmem>>, vector<8x32x32xf32>,
    return
  }
  func.func @transform_0(%arg0: i32) -> (i32, i32) {
    %c0_i32 = arith.constant 0 : i32
    %c0_i32_0 = arith.constant 0 : i32
    %c0_i32_1 = arith.constant 0 : i32
    return %c0_i32, %c0_i32_0 : i32, i32
  }
  func.func @transform_1(%arg0: i32) -> (i32, i32) {
    %c0_i32 = arith.constant 0 : i32
    %c0_i32_0 = arith.constant 0 : i32
    %c0_i32_1 = arith.constant 0 : i32
    return %c0_i32, %c0_i32_0 : i32, i32
  }
  func.func @transform_2(%arg0: i32) -> (i32, i32, i32) {
    %c0_i32 = arith.constant 0 : i32
    %c0_i32_0 = arith.constant 0 : i32
    %c0_i32_1 = arith.constant 0 : i32
    return %arg0, %c0_i32, %c0_i32_0 : i32, i32, i32
  }
  func.func @transform_3(%arg0: i32) -> (i32, i32, i32) {
    %c0_i32 = arith.constant 0 : i32
    %c0_i32_0 = arith.constant 0 : i32
    %c0_i32_1 = arith.constant 0 : i32
    return %arg0, %c0_i32, %c0_i32_0 : i32, i32, i32
  }
}

</mosaic_0001>

<bundles_post_ra>
// kernel: tpu_custom_call.1
= control target key start
LH: loop header
LB: loop body
LE: loop exit
PB: predicated region body
PF: predicated region fallthrough
CT: control target
= control target key end

     0   :  { %8 = vsyncpa [#allocation3], 0  ;;  %s1431_s0 = inlined_call_operand.vmem [shape: f32[32,16], index: 0, kind: input, shape index: {}]   ;;  %s1432_s1 = inlined_call_operand.vmem [shape: f32[16,32], index: 1, kind: input, shape index: {}]   ;;  %s1433_s2 = inlined_call_operand.hbm [shape: f32[8,16,16], index: 2, kind: input, shape index: {}]   ;;  %s1434_s3 = inlined_call_operand.hbm [shape: f32[8,32,32], index: 3, kind: output, shape index: {}]  }
   0x1   :  { %9 = vsyncpa [#allocation4], 0  ;;  %s1257_s12 = smov [#allocation2]  }
   0x2   :  { %s19_s13 = sshll.u32 %s1257_s12, 4  ;;  %s20_s13 = int_to_ptr.vmem [resolvable:$true] %s19_s13 }
   0x3   :  { %s1221_s14 = scalar_lea.vmem %s20_s13, 2048  ;;  %p1226_p1 = scmp.lt.s32.totalorder %s20_s13, %s20_s13 }
   0x4   :  { %p1222_p0 = scmp.ne.s32.totalorder %s20_s13, %s1221_s14  ;;  %p1227_p2 = scmp.lt.s32.totalorder %s1221_s14, %s1221_s14 }
   0x6   :  { %p1228_p3 = por %p1227_p2, %p1226_p1 }
   0x8   :  { %p1229_p4 = pnand %p1228_p3, %p1222_p0 }
   0xa   :  { %1232 = shalt.err (!%p1229_p4)
}
   0xb   :  { %s1258_s15 = smov 128   ;;  %s1259_s16 = smov 8  }
   0xc   :  { %25 = dma.hbm_to_vmem [thread:$0]  %s1433_s2, 2048, %s20_s13, [#allocation3], %s1258_s15, %s1258_s15, %s1259_s16  }
   0xd   :  { %1253 = dma.done.wait [#allocation3], 2048  }
   0xe   :  { %1254 = vsyncadd [#allocation3], 4294965248  ;;  %vm47_vm0 = vcmask 130048   ;;  %v46_v0 = vld [vmem:[%s1432_s1 + $0x8] sm:$0xff]  ;;  %v45_v1 = vld [vmem:[%s1432_s1] sm:$0xff]  ;;  %vm937_vm1 = vcmask 261120  }
   0xf   :  { %v29_v2 = vld [vmem:[#allocation2] sm:$0xff]  ;;  %1101 = vmatprep.subr.mxu0 %v46_v0  ;;  %v30_v3 = vld [vmem:[#allocation2 + $0x8] sm:$0xff]  ;;  %v31_v4 = vld [vmem:[#allocation2 + $0x10] sm:$0xff] }
  0x10   :  { %1105 = vmatprep.mubr.msk.f32.mxu0 %vm47_vm0, %v29_v2  ;;  %1102 = vmatpush3.msra.mxu0 %v46_v0  ;;  %v32_v5 = vld [vmem:[#allocation2 + $0x18] sm:$0xff]  ;;  %v33_v6 = vld [vmem:[#allocation2 + $0x20] sm:$0xff]  ;;  %v34_v7 = vld [vmem:[#allocation2 + $0x28] sm:$0xff] }
  0x11   :  { %1103 = vmatprep.subr.mxu0 %v45_v1  ;;  %v35_v8 = vld [vmem:[#allocation2 + $0x30] sm:$0xff]  ;;  %v36_v9 = vld [vmem:[#allocation2 + $0x38] sm:$0xff]  ;;  %v37_v10 = vld [vmem:[#allocation2 + $0x40] sm:$0xff] }
  0x12   :  { %1104 = vmatpush3.msra.mxu0 %v45_v1  ;;  %v38_v11 = vld [vmem:[#allocation2 + $0x48] sm:$0xff]  ;;  %v39_v12 = vld [vmem:[#allocation2 + $0x50] sm:$0xff]  ;;  %v40_v13 = vld [vmem:[#allocation2 + $0x58] sm:$0xff] }
  0x13   :  { %1106 = vmatmul.mubr.msk.f32.vlgmr.msra.gmra.mxu0 %vm47_vm0, %v30_v3  ;;  %v41_v14 = vld [vmem:[#allocation2 + $0x60] sm:$0xff]  ;;  %v42_v15 = vld [vmem:[#allocation2 + $0x68] sm:$0xff]  ;;  %v43_v16 = vld [vmem:[#allocation2 + $0x70] sm:$0xff] }
  0x14   :  { %1108 = vmatprep.mubr.msk.f32.mxu0 %vm47_vm0, %v31_v4  ;;  %v44_v17 = vld [vmem:[#allocation2 + $0x78] sm:$0xff]  ;;  %v1312_v18 = vld [vmem:[%s1431_s0] sm:$0xff]  ;;  %v1321_v21 = vld [vmem:[%s1431_s0 + $0x8] sm:$0xff] }
  0x15   :  { %1133 = vmatprep.mubr.msk.f32.mxu1 %vm47_vm0, %v1312_v18  ;;  %v1326_v22 = vld [vmem:[%s1431_s0 + $0x10] sm:$0xff]  ;;  %v1335_v25 = vld [vmem:[%s1431_s0 + $0x18] sm:$0xff]  ;;  %s1260_s0 = smov [#allocation5]  }
  0x16   :  { %s975_s29 = sshll.u32 %s1260_s0, 4  ;;  %s976_s29 = int_to_ptr.vmem [resolvable:$true] %s975_s29 }
  0x17   :  { %1109 = vmatmul.mubr.msk.f32.gmra.mxu0 %vm47_vm0, %v32_v5  ;;  %s1233_s30 = scalar_lea.vmem %s976_s29, 4096  ;;  %p1238_p6 = scmp.lt.s32.totalorder %s976_s29, %s976_s29 }
  0x18   :  { %1111 = vmatprep.mubr.msk.f32.mxu0 %vm47_vm0, %v33_v6  ;;  %p1234_p5 = scmp.ne.s32.totalorder %s976_s29, %s1233_s30  ;;  %p1239_p7 = scmp.lt.s32.totalorder %s1233_s30, %s1233_s30 }
  0x1a   :  { %p1240_p8 = por %p1239_p7, %p1238_p6 }
  0x1b   :  { %1112 = vmatmul.mubr.msk.f32.gmra.mxu0 %vm47_vm0, %v34_v7 }
  0x1c   :  { %1114 = vmatprep.mubr.msk.f32.mxu0 %vm47_vm0, %v35_v8  ;;  %p1241_p9 = pnand %p1240_p8, %p1234_p5 }
  0x1f   :  { %1115 = vmatmul.mubr.msk.f32.gmra.mxu0 %vm47_vm0, %v36_v9 }
  0x20   :  { %1117 = vmatprep.mubr.msk.f32.mxu0 %vm47_vm0, %v37_v10 }
  0x23   :  { %1118 = vmatmul.mubr.msk.f32.gmra.mxu0 %vm47_vm0, %v38_v11 }
  0x24   :  { %1120 = vmatprep.mubr.msk.f32.mxu0 %vm47_vm0, %v39_v12 }
  0x27   :  { %1121 = vmatmul.mubr.msk.f32.gmra.mxu0 %vm47_vm0, %v40_v13 }
  0x28   :  { %1123 = vmatprep.mubr.msk.f32.mxu0 %vm47_vm0, %v41_v14 }
  0x2b   :  { %1124 = vmatmul.mubr.msk.f32.gmra.mxu0 %vm47_vm0, %v42_v15 }
  0x2c   :  { %1126 = vmatprep.mubr.msk.f32.mxu0 %vm47_vm0, %v43_v16 }
  0x2f   :  { %1127 = vmatmul.mubr.msk.f32.gmra.mxu0 %vm47_vm0, %v44_v17 }
  0x30   :  { %1173 = vmatprep.mubr.msk.f32.mxu0 %vm47_vm0, %v1312_v18 }
  0xd3   :  { %v1107_v19 = vpop.f32.mrf.mxu0 }
  0xd4   :  { %1129 = vmatprep.subr.mxu1 %v1107_v19 }
  0xd5   :  { %v162_v20 = vpop.f32.mrf.mxu0  ;;  %1130 = vmatpush3.msra.mxu1 %v1107_v19 }
  0xd6   :  { %1131 = vmatprep.subr.mxu1 %v162_v20 }
  0xd7   :  { %v1110_v23 = vpop.f32.mrf.mxu0  ;;  %1132 = vmatpush3.msra.mxu1 %v162_v20 }
  0xd8   :  { %1134 = vmatmul.mubr.msk.f32.vlgmr.msra.gmra.mxu1 %vm47_vm0, %v1321_v21  ;;  %1139 = vmatprep.subr.mxu1 %v1110_v23 }
  0xd9   :  { %v172_v24 = vpop.f32.mrf.mxu0  ;;  %1140 = vmatpush3.msra.mxu1 %v1110_v23  ;;  %1136 = vmatprep.mubr.msk.f32.mxu1 %vm47_vm0, %v1326_v22 }
  0xda   :  { %1141 = vmatprep.subr.mxu1 %v172_v24 }
  0xdb   :  { %v1113_v26 = vpop.f32.mrf.mxu0  ;;  %1142 = vmatpush3.msra.mxu1 %v172_v24 }
  0xdc   :  { %1137 = vmatmul.mubr.msk.f32.gmra.mxu1 %vm47_vm0, %v1335_v25  ;;  %1149 = vmatprep.subr.mxu1 %v1113_v26 }
  0xdd   :  { %v182_v27 = vpop.f32.mrf.mxu0  ;;  %1143 = vmatprep.mubr.msk.f32.mxu1 %vm47_vm0, %v1312_v18 }
  0xdf   :  { %v1116_v28 = vpop.f32.mrf.mxu0 }
  0xe0   :  { %1144 = vmatmul.mubr.msk.f32.vlgmr.msra.gmra.mxu1 %vm47_vm0, %v1321_v21 }
  0xe1   :  { %1150 = vmatpush3.msra.mxu1 %v1113_v26  ;;  %v192_v29 = vpop.f32.mrf.mxu0  ;;  %1146 = vmatprep.mubr.msk.f32.mxu1 %vm47_vm0, %v1326_v22 }
  0xe2   :  { %1151 = vmatprep.subr.mxu1 %v182_v27 }
  0xe3   :  { %1152 = vmatpush3.msra.mxu1 %v182_v27  ;;  %v1119_v30 = vpop.f32.mrf.mxu0 }
  0xe4   :  { %1159 = vmatprep.subr.mxu1 %v1116_v28  ;;  %1147 = vmatmul.mubr.msk.f32.gmra.mxu1 %vm47_vm0, %v1335_v25 }
  0xe5   :  { %1169 = vmatprep.subr.mxu0 %v1119_v30  ;;  %v202_v31 = vpop.f32.mrf.mxu0  ;;  %1153 = vmatprep.mubr.msk.f32.mxu1 %vm47_vm0, %v1312_v18 }
  0xe6   :  { %1170 = vmatpush3.msra.mxu0 %v1119_v30 }
  0xe7   :  { %1171 = vmatprep.subr.mxu0 %v202_v31  ;;  %v1122_v32 = vpop.f32.mrf.mxu0 }
  0xe8   :  { %1172 = vmatpush3.msra.mxu0 %v202_v31  ;;  %1154 = vmatmul.mubr.msk.f32.vlgmr.msra.gmra.mxu1 %vm47_vm0, %v1321_v21 }
  0xe9   :  { %1160 = vmatpush3.msra.mxu1 %v1116_v28  ;;  %1156 = vmatprep.mubr.msk.f32.mxu1 %vm47_vm0, %v1326_v22  ;;  %v212_v33 = vpop.f32.mrf.mxu0 }
  0xea   :  { %1161 = vmatprep.subr.mxu1 %v192_v29  ;;  %1174 = vmatmul.mubr.msk.f32.vlgmr.msra.gmra.mxu0 %vm47_vm0, %v1321_v21 }
  0xeb   :  { %1162 = vmatpush3.msra.mxu1 %v192_v29  ;;  %v1125_v34 = vpop.f32.mrf.mxu0  ;;  %1176 = vmatprep.mubr.msk.f32.mxu0 %vm47_vm0, %v1326_v22 }
  0xec   :  { %1157 = vmatmul.mubr.msk.f32.gmra.mxu1 %vm47_vm0, %v1335_v25  ;;  %1179 = vmatprep.subr.mxu1 %v1122_v32 }
  0xed   :  { %1163 = vmatprep.mubr.msk.f32.mxu1 %vm47_vm0, %v1312_v18  ;;  %1189 = vmatprep.subr.mxu0 %v1125_v34  ;;  %v222_v35 = vpop.f32.mrf.mxu0 }
  0xee   :  { %1190 = vmatpush3.msra.mxu0 %v1125_v34 }
  0xef   :  { %1191 = vmatprep.subr.mxu0 %v222_v35  ;;  %1177 = vmatmul.mubr.msk.f32.gmra.mxu0 %vm47_vm0, %v1335_v25  ;;  %v1128_v36 = vpop.f32.mrf.mxu0 }
  0xf0   :  { %1164 = vmatmul.mubr.msk.f32.vlgmr.msra.gmra.mxu1 %vm47_vm0, %v1321_v21  ;;  %1192 = vmatpush3.msra.mxu0 %v222_v35 }
  0xf1   :  { %1180 = vmatpush3.msra.mxu1 %v1122_v32  ;;  %1166 = vmatprep.mubr.msk.f32.mxu1 %vm47_vm0, %v1326_v22  ;;  %v232_v37 = vpop.f32.mrf.mxu0 }
  0xf2   :  { %1181 = vmatprep.subr.mxu1 %v212_v33  ;;  %1193 = vmatprep.mubr.msk.f32.mxu0 %vm47_vm0, %v1312_v18 }
  0xf3   :  { %1182 = vmatpush3.msra.mxu1 %v212_v33  ;;  %1194 = vmatmul.mubr.msk.f32.vlgmr.msra.gmra.mxu0 %vm47_vm0, %v1321_v21 }
  0xf4   :  { %1167 = vmatmul.mubr.msk.f32.gmra.mxu1 %vm47_vm0, %v1335_v25  ;;  %1199 = vmatprep.subr.mxu1 %v1128_v36 }
  0xf5   :  { %1183 = vmatprep.mubr.msk.f32.mxu1 %vm47_vm0, %v1312_v18  ;;  %1196 = vmatprep.mubr.msk.f32.mxu0 %vm47_vm0, %v1326_v22 }
  0xf7   :  { %1197 = vmatmul.mubr.msk.f32.gmra.mxu0 %vm47_vm0, %v1335_v25 }
  0xf8   :  { %1184 = vmatmul.mubr.msk.f32.vlgmr.msra.gmra.mxu1 %vm47_vm0, %v1321_v21 }
  0xf9   :  { %1200 = vmatpush3.msra.mxu1 %v1128_v36  ;;  %1186 = vmatprep.mubr.msk.f32.mxu1 %vm47_vm0, %v1326_v22 }
  0xfa   :  { %1201 = vmatprep.subr.mxu1 %v232_v37 }
  0xfb   :  { %1202 = vmatpush3.msra.mxu1 %v232_v37 }
  0xfc   :  { %1187 = vmatmul.mubr.msk.f32.gmra.mxu1 %vm47_vm0, %v1335_v25 }
  0xfd   :  { %1203 = vmatprep.mubr.msk.f32.mxu1 %vm47_vm0, %v1312_v18 }
 0x100   :  { %1204 = vmatmul.mubr.msk.f32.vlgmr.msra.gmra.mxu1 %vm47_vm0, %v1321_v21 }
 0x101   :  { %1206 = vmatprep.mubr.msk.f32.mxu1 %vm47_vm0, %v1326_v22 }
 0x104   :  { %1207 = vmatmul.mubr.msk.f32.gmra.mxu1 %vm47_vm0, %v1335_v25 }
 0x198   :  { %v1135_v38 = vpop.f32.mrf.mxu1 }
 0x199   :  { %939 = vst.msk [vmem:[#allocation5 + $0x8] sm:$0xff] %vm937_vm1, %v1135_v38 }
 0x19a   :  { %v323_v39 = vpop.f32.mrf.mxu1 }
 0x19b   :  { %938 = vst.msk [vmem:[#allocation5] sm:$0xff] %vm937_vm1, %v323_v39 }
 0x19c   :  { %v1138_v40 = vpop.f32.mrf.mxu1 }
 0x19d   :  { %941 = vst.msk [vmem:[#allocation5 + $0x18] sm:$0xff] %vm937_vm1, %v1138_v40 }
 0x19e   :  { %v333_v41 = vpop.f32.mrf.mxu1 }
 0x19f   :  { %940 = vst.msk [vmem:[#allocation5 + $0x10] sm:$0xff] %vm937_vm1, %v333_v41 }
 0x1a0   :  { %v1145_v42 = vpop.f32.mrf.mxu1 }
 0x1a1   :  { %943 = vst.msk [vmem:[#allocation5 + $0x28] sm:$0xff] %vm937_vm1, %v1145_v42 }
 0x1a2   :  { %v408_v43 = vpop.f32.mrf.mxu1 }
 0x1a3   :  { %942 = vst.msk [vmem:[#allocation5 + $0x20] sm:$0xff] %vm937_vm1, %v408_v43 }
 0x1a4   :  { %v1148_v44 = vpop.f32.mrf.mxu1 }
 0x1a5   :  { %945 = vst.msk [vmem:[#allocation5 + $0x38] sm:$0xff] %vm937_vm1, %v1148_v44 }
 0x1a6   :  { %v418_v45 = vpop.f32.mrf.mxu1 }
 0x1a7   :  { %944 = vst.msk [vmem:[#allocation5 + $0x30] sm:$0xff] %vm937_vm1, %v418_v45 }
 0x1a8   :  { %v1155_v46 = vpop.f32.mrf.mxu1 }
 0x1a9   :  { %947 = vst.msk [vmem:[#allocation5 + $0x48] sm:$0xff] %vm937_vm1, %v1155_v46 }
 0x1aa   :  { %v493_v47 = vpop.f32.mrf.mxu1  ;;  %v1175_v48 = vpop.f32.mrf.mxu0 }
 0x1ab   :  { %946 = vst.msk [vmem:[#allocation5 + $0x40] sm:$0xff] %vm937_vm1, %v493_v47  ;;  %955 = vst.msk [vmem:[#allocation5 + $0x88] sm:$0xff] %vm937_vm1, %v1175_v48 }
 0x1ac   :  { %v1158_v49 = vpop.f32.mrf.mxu1  ;;  %v663_v50 = vpop.f32.mrf.mxu0 }
 0x1ad   :  { %949 = vst.msk [vmem:[#allocation5 + $0x58] sm:$0xff] %vm937_vm1, %v1158_v49  ;;  %954 = vst.msk [vmem:[#allocation5 + $0x80] sm:$0xff] %vm937_vm1, %v663_v50 }
 0x1ae   :  { %v503_v51 = vpop.f32.mrf.mxu1 }
 0x1af   :  { %948 = vst.msk [vmem:[#allocation5 + $0x50] sm:$0xff] %vm937_vm1, %v503_v51  ;;  %v1178_v52 = vpop.f32.mrf.mxu0 }
 0x1b0   :  { %v1165_v53 = vpop.f32.mrf.mxu1  ;;  %957 = vst.msk [vmem:[#allocation5 + $0x98] sm:$0xff] %vm937_vm1, %v1178_v52 }
 0x1b1   :  { %951 = vst.msk [vmem:[#allocation5 + $0x68] sm:$0xff] %vm937_vm1, %v1165_v53  ;;  %v673_v54 = vpop.f32.mrf.mxu0 }
 0x1b2   :  { %v578_v55 = vpop.f32.mrf.mxu1  ;;  %956 = vst.msk [vmem:[#allocation5 + $0x90] sm:$0xff] %vm937_vm1, %v673_v54 }
 0x1b3   :  { %950 = vst.msk [vmem:[#allocation5 + $0x60] sm:$0xff] %vm937_vm1, %v578_v55  ;;  %v1195_v56 = vpop.f32.mrf.mxu0 }
 0x1b4   :  { %v1168_v57 = vpop.f32.mrf.mxu1  ;;  %963 = vst.msk [vmem:[#allocation5 + $0xc8] sm:$0xff] %vm937_vm1, %v1195_v56 }
 0x1b5   :  { %953 = vst.msk [vmem:[#allocation5 + $0x78] sm:$0xff] %vm937_vm1, %v1168_v57  ;;  %v833_v58 = vpop.f32.mrf.mxu0 }
 0x1b6   :  { %v588_v59 = vpop.f32.mrf.mxu1  ;;  %962 = vst.msk [vmem:[#allocation5 + $0xc0] sm:$0xff] %vm937_vm1, %v833_v58 }
 0x1b7   :  { %952 = vst.msk [vmem:[#allocation5 + $0x70] sm:$0xff] %vm937_vm1, %v588_v59  ;;  %v1198_v60 = vpop.f32.mrf.mxu0 }
 0x1b8   :  { %v1185_v61 = vpop.f32.mrf.mxu1  ;;  %965 = vst.msk [vmem:[#allocation5 + $0xd8] sm:$0xff] %vm937_vm1, %v1198_v60 }
 0x1b9   :  { %959 = vst.msk [vmem:[#allocation5 + $0xa8] sm:$0xff] %vm937_vm1, %v1185_v61  ;;  %v843_v62 = vpop.f32.mrf.mxu0 }
 0x1ba   :  { %v748_v63 = vpop.f32.mrf.mxu1  ;;  %964 = vst.msk [vmem:[#allocation5 + $0xd0] sm:$0xff] %vm937_vm1, %v843_v62 }
 0x1bb   :  { %958 = vst.msk [vmem:[#allocation5 + $0xa0] sm:$0xff] %vm937_vm1, %v748_v63 }
 0x1bc   :  { %v1188_v0 = vpop.f32.mrf.mxu1 }
 0x1bd   :  { %961 = vst.msk [vmem:[#allocation5 + $0xb8] sm:$0xff] %vm937_vm1, %v1188_v0 }
 0x1be   :  { %v758_v1 = vpop.f32.mrf.mxu1 }
 0x1bf   :  { %960 = vst.msk [vmem:[#allocation5 + $0xb0] sm:$0xff] %vm937_vm1, %v758_v1 }
 0x1c0   :  { %v1205_v2 = vpop.f32.mrf.mxu1 }
 0x1c1   :  { %967 = vst.msk [vmem:[#allocation5 + $0xe8] sm:$0xff] %vm937_vm1, %v1205_v2 }
 0x1c2   :  { %v918_v3 = vpop.f32.mrf.mxu1 }
 0x1c3   :  { %966 = vst.msk [vmem:[#allocation5 + $0xe0] sm:$0xff] %vm937_vm1, %v918_v3 }
 0x1c4   :  { %v1208_v4 = vpop.f32.mrf.mxu1 }
 0x1c5   :  { %969 = vst.msk [vmem:[#allocation5 + $0xf8] sm:$0xff] %vm937_vm1, %v1208_v4 }
 0x1c6   :  { %v928_v5 = vpop.f32.mrf.mxu1 }
 0x1c7   :  { %968 = vst.msk [vmem:[#allocation5 + $0xf0] sm:$0xff] %vm937_vm1, %v928_v5 }
 0x1c8   :  { %1244 = shalt.err (!%p1241_p9)
}
 0x1c9   :  { %981 = dma.vmem_to_hbm [thread:$0]  %s976_s29, 4096, %s1434_s3, [#allocation4], %s1258_s15, %s1258_s15, %s1259_s16  }
 0x1ca   :  { %1255 = dma.done.wait [#allocation4], 4096  }
 0x1cb   :  { %1256 = vsyncadd [#allocation4], 4294963200 }
 0x1cc   :  { %985 = vsyncpa [#allocation3], 1 }
 0x1cd   :  { %986 = vsyncpa [#allocation4], 1 }

// kernel: tpu_custom_call.1
= control target key start
LH: loop header
LB: loop body
LE: loop exit
PB: predicated region body
PF: predicated region fallthrough
CT: control target
= control target key end

     0   :  { %8 = vsyncpa [#allocation3], 0  ;;  %s1431_s0 = inlined_call_operand.vmem [shape: f32[32,16], index: 0, kind: input, shape index: {}]   ;;  %s1432_s1 = inlined_call_operand.vmem [shape: f32[16,32], index: 1, kind: input, shape index: {}]   ;;  %s1433_s2 = inlined_call_operand.hbm [shape: f32[8,16,16], index: 2, kind: input, shape index: {}]   ;;  %s1434_s3 = inlined_call_operand.hbm [shape: f32[8,32,32], index: 3, kind: output, shape index: {}]  }
   0x1   :  { %9 = vsyncpa [#allocation4], 0  ;;  %s1257_s12 = smov [#allocation2]  }
   0x2   :  { %s19_s13 = sshll.u32 %s1257_s12, 4  ;;  %s20_s13 = int_to_ptr.vmem [resolvable:$true] %s19_s13 }
   0x3   :  { %s1221_s14 = scalar_lea.vmem %s20_s13, 2048  ;;  %p1226_p1 = scmp.lt.s32.totalorder %s20_s13, %s20_s13 }
   0x4   :  { %p1222_p0 = scmp.ne.s32.totalorder %s20_s13, %s1221_s14  ;;  %p1227_p2 = scmp.lt.s32.totalorder %s1221_s14, %s1221_s14 }
   0x6   :  { %p1228_p3 = por %p1227_p2, %p1226_p1 }
   0x8   :  { %p1229_p4 = pnand %p1228_p3, %p1222_p0 }
   0xa   :  { %1232 = shalt.err (!%p1229_p4)
}
   0xb   :  { %s1258_s15 = smov 128   ;;  %s1259_s16 = smov 8  }
   0xc   :  { %25 = dma.hbm_to_vmem [thread:$0]  %s1433_s2, 2048, %s20_s13, [#allocation3], %s1258_s15, %s1258_s15, %s1259_s16  }
   0xd   :  { %1253 = dma.done.wait [#allocation3], 2048  }
   0xe   :  { %1254 = vsyncadd [#allocation3], 4294965248  ;;  %vm47_vm0 = vcmask 130048   ;;  %v46_v0 = vld [vmem:[%s1432_s1 + $0x8] sm:$0xff]  ;;  %v45_v1 = vld [vmem:[%s1432_s1] sm:$0xff]  ;;  %vm937_vm1 = vcmask 261120  }
   0xf   :  { %v29_v2 = vld [vmem:[#allocation2] sm:$0xff]  ;;  %1101 = vmatprep.subr.mxu0 %v46_v0  ;;  %v30_v3 = vld [vmem:[#allocation2 + $0x8] sm:$0xff]  ;;  %v31_v4 = vld [vmem:[#allocation2 + $0x10] sm:$0xff] }
  0x10   :  { %1105 = vmatprep.mubr.msk.f32.mxu0 %vm47_vm0, %v29_v2  ;;  %1102 = vmatpush3.msra.mxu0 %v46_v0  ;;  %v32_v5 = vld [vmem:[#allocation2 + $0x18] sm:$0xff]  ;;  %v33_v6 = vld [vmem:[#allocation2 + $0x20] sm:$0xff]  ;;  %v34_v7 = vld [vmem:[#allocation2 + $0x28] sm:$0xff] }
  0x11   :  { %1103 = vmatprep.subr.mxu0 %v45_v1  ;;  %v35_v8 = vld [vmem:[#allocation2 + $0x30] sm:$0xff]  ;;  %v36_v9 = vld [vmem:[#allocation2 + $0x38] sm:$0xff]  ;;  %v37_v10 = vld [vmem:[#allocation2 + $0x40] sm:$0xff] }
  0x12   :  { %1104 = vmatpush3.msra.mxu0 %v45_v1  ;;  %v38_v11 = vld [vmem:[#allocation2 + $0x48] sm:$0xff]  ;;  %v39_v12 = vld [vmem:[#allocation2 + $0x50] sm:$0xff]  ;;  %v40_v13 = vld [vmem:[#allocation2 + $0x58] sm:$0xff] }
  0x13   :  { %1106 = vmatmul.mubr.msk.f32.vlgmr.msra.gmra.mxu0 %vm47_vm0, %v30_v3  ;;  %v41_v14 = vld [vmem:[#allocation2 + $0x60] sm:$0xff]  ;;  %v42_v15 = vld [vmem:[#allocation2 + $0x68] sm:$0xff]  ;;  %v43_v16 = vld [vmem:[#allocation2 + $0x70] sm:$0xff] }
  0x14   :  { %1108 = vmatprep.mubr.msk.f32.mxu0 %vm47_vm0, %v31_v4  ;;  %v44_v17 = vld [vmem:[#allocation2 + $0x78] sm:$0xff]  ;;  %v1312_v18 = vld [vmem:[%s1431_s0] sm:$0xff]  ;;  %v1321_v21 = vld [vmem:[%s1431_s0 + $0x8] sm:$0xff] }
  0x15   :  { %1133 = vmatprep.mubr.msk.f32.mxu1 %vm47_vm0, %v1312_v18  ;;  %v1326_v22 = vld [vmem:[%s1431_s0 + $0x10] sm:$0xff]  ;;  %v1335_v25 = vld [vmem:[%s1431_s0 + $0x18] sm:$0xff]  ;;  %s1260_s0 = smov [#allocation5]  }
  0x16   :  { %s975_s29 = sshll.u32 %s1260_s0, 4  ;;  %s976_s29 = int_to_ptr.vmem [resolvable:$true] %s975_s29 }
  0x17   :  { %1109 = vmatmul.mubr.msk.f32.gmra.mxu0 %vm47_vm0, %v32_v5  ;;  %s1233_s30 = scalar_lea.vmem %s976_s29, 4096  ;;  %p1238_p6 = scmp.lt.s32.totalorder %s976_s29, %s976_s29 }
  0x18   :  { %1111 = vmatprep.mubr.msk.f32.mxu0 %vm47_vm0, %v33_v6  ;;  %p1234_p5 = scmp.ne.s32.totalorder %s976_s29, %s1233_s30  ;;  %p1239_p7 = scmp.lt.s32.totalorder %s1233_s30, %s1233_s30 }
  0x1a   :  { %p1240_p8 = por %p1239_p7, %p1238_p6 }
  0x1b   :  { %1112 = vmatmul.mubr.msk.f32.gmra.mxu0 %vm47_vm0, %v34_v7 }
  0x1c   :  { %1114 = vmatprep.mubr.msk.f32.mxu0 %vm47_vm0, %v35_v8  ;;  %p1241_p9 = pnand %p1240_p8, %p1234_p5 }
  0x1f   :  { %1115 = vmatmul.mubr.msk.f32.gmra.mxu0 %vm47_vm0, %v36_v9 }
  0x20   :  { %1117 = vmatprep.mubr.msk.f32.mxu0 %vm47_vm0, %v37_v10 }
  0x23   :  { %1118 = vmatmul.mubr.msk.f32.gmra.mxu0 %vm47_vm0, %v38_v11 }
  0x24   :  { %1120 = vmatprep.mubr.msk.f32.mxu0 %vm47_vm0, %v39_v12 }
  0x27   :  { %1121 = vmatmul.mubr.msk.f32.gmra.mxu0 %vm47_vm0, %v40_v13 }
  0x28   :  { %1123 = vmatprep.mubr.msk.f32.mxu0 %vm47_vm0, %v41_v14 }
  0x2b   :  { %1124 = vmatmul.mubr.msk.f32.gmra.mxu0 %vm47_vm0, %v42_v15 }
  0x2c   :  { %1126 = vmatprep.mubr.msk.f32.mxu0 %vm47_vm0, %v43_v16 }
  0x2f   :  { %1127 = vmatmul.mubr.msk.f32.gmra.mxu0 %vm47_vm0, %v44_v17 }
  0x30   :  { %1173 = vmatprep.mubr.msk.f32.mxu0 %vm47_vm0, %v1312_v18 }
  0xd3   :  { %v1107_v19 = vpop.f32.mrf.mxu0 }
  0xd4   :  { %1129 = vmatprep.subr.mxu1 %v1107_v19 }
  0xd5   :  { %v162_v20 = vpop.f32.mrf.mxu0  ;;  %1130 = vmatpush3.msra.mxu1 %v1107_v19 }
  0xd6   :  { %1131 = vmatprep.subr.mxu1 %v162_v20 }
  0xd7   :  { %v1110_v23 = vpop.f32.mrf.mxu0  ;;  %1132 = vmatpush3.msra.mxu1 %v162_v20 }
  0xd8   :  { %1134 = vmatmul.mubr.msk.f32.vlgmr.msra.gmra.mxu1 %vm47_vm0, %v1321_v21  ;;  %1139 = vmatprep.subr.mxu1 %v1110_v23 }
  0xd9   :  { %v172_v24 = vpop.f32.mrf.mxu0  ;;  %1140 = vmatpush3.msra.mxu1 %v1110_v23  ;;  %1136 = vmatprep.mubr.msk.f32.mxu1 %vm47_vm0, %v1326_v22 }
  0xda   :  { %1141 = vmatprep.subr.mxu1 %v172_v24 }
  0xdb   :  { %v1113_v26 = vpop.f32.mrf.mxu0  ;;  %1142 = vmatpush3.msra.mxu1 %v172_v24 }
  0xdc   :  { %1137 = vmatmul.mubr.msk.f32.gmra.mxu1 %vm47_vm0, %v1335_v25  ;;  %1149 = vmatprep.subr.mxu1 %v1113_v26 }
  0xdd   :  { %v182_v27 = vpop.f32.mrf.mxu0  ;;  %1143 = vmatprep.mubr.msk.f32.mxu1 %vm47_vm0, %v1312_v18 }
  0xdf   :  { %v1116_v28 = vpop.f32.mrf.mxu0 }
  0xe0   :  { %1144 = vmatmul.mubr.msk.f32.vlgmr.msra.gmra.mxu1 %vm47_vm0, %v1321_v21 }
  0xe1   :  { %1150 = vmatpush3.msra.mxu1 %v1113_v26  ;;  %v192_v29 = vpop.f32.mrf.mxu0  ;;  %1146 = vmatprep.mubr.msk.f32.mxu1 %vm47_vm0, %v1326_v22 }
  0xe2   :  { %1151 = vmatprep.subr.mxu1 %v182_v27 }
  0xe3   :  { %1152 = vmatpush3.msra.mxu1 %v182_v27  ;;  %v1119_v30 = vpop.f32.mrf.mxu0 }
  0xe4   :  { %1159 = vmatprep.subr.mxu1 %v1116_v28  ;;  %1147 = vmatmul.mubr.msk.f32.gmra.mxu1 %vm47_vm0, %v1335_v25 }
  0xe5   :  { %1169 = vmatprep.subr.mxu0 %v1119_v30  ;;  %v202_v31 = vpop.f32.mrf.mxu0  ;;  %1153 = vmatprep.mubr.msk.f32.mxu1 %vm47_vm0, %v1312_v18 }
  0xe6   :  { %1170 = vmatpush3.msra.mxu0 %v1119_v30 }
  0xe7   :  { %1171 = vmatprep.subr.mxu0 %v202_v31  ;;  %v1122_v32 = vpop.f32.mrf.mxu0 }
  0xe8   :  { %1172 = vmatpush3.msra.mxu0 %v202_v31  ;;  %1154 = vmatmul.mubr.msk.f32.vlgmr.msra.gmra.mxu1 %vm47_vm0, %v1321_v21 }
  0xe9   :  { %1160 = vmatpush3.msra.mxu1 %v1116_v28  ;;  %1156 = vmatprep.mubr.msk.f32.mxu1 %vm47_vm0, %v1326_v22  ;;  %v212_v33 = vpop.f32.mrf.mxu0 }
  0xea   :  { %1161 = vmatprep.subr.mxu1 %v192_v29  ;;  %1174 = vmatmul.mubr.msk.f32.vlgmr.msra.gmra.mxu0 %vm47_vm0, %v1321_v21 }
  0xeb   :  { %1162 = vmatpush3.msra.mxu1 %v192_v29  ;;  %v1125_v34 = vpop.f32.mrf.mxu0  ;;  %1176 = vmatprep.mubr.msk.f32.mxu0 %vm47_vm0, %v1326_v22 }
  0xec   :  { %1157 = vmatmul.mubr.msk.f32.gmra.mxu1 %vm47_vm0, %v1335_v25  ;;  %1179 = vmatprep.subr.mxu1 %v1122_v32 }
  0xed   :  { %1163 = vmatprep.mubr.msk.f32.mxu1 %vm47_vm0, %v1312_v18  ;;  %1189 = vmatprep.subr.mxu0 %v1125_v34  ;;  %v222_v35 = vpop.f32.mrf.mxu0 }
  0xee   :  { %1190 = vmatpush3.msra.mxu0 %v1125_v34 }
  0xef   :  { %1191 = vmatprep.subr.mxu0 %v222_v35  ;;  %1177 = vmatmul.mubr.msk.f32.gmra.mxu0 %vm47_vm0, %v1335_v25  ;;  %v1128_v36 = vpop.f32.mrf.mxu0 }
  0xf0   :  { %1164 = vmatmul.mubr.msk.f32.vlgmr.msra.gmra.mxu1 %vm47_vm0, %v1321_v21  ;;  %1192 = vmatpush3.msra.mxu0 %v222_v35 }
  0xf1   :  { %1180 = vmatpush3.msra.mxu1 %v1122_v32  ;;  %1166 = vmatprep.mubr.msk.f32.mxu1 %vm47_vm0, %v1326_v22  ;;  %v232_v37 = vpop.f32.mrf.mxu0 }
  0xf2   :  { %1181 = vmatprep.subr.mxu1 %v212_v33  ;;  %1193 = vmatprep.mubr.msk.f32.mxu0 %vm47_vm0, %v1312_v18 }
  0xf3   :  { %1182 = vmatpush3.msra.mxu1 %v212_v33  ;;  %1194 = vmatmul.mubr.msk.f32.vlgmr.msra.gmra.mxu0 %vm47_vm0, %v1321_v21 }
  0xf4   :  { %1167 = vmatmul.mubr.msk.f32.gmra.mxu1 %vm47_vm0, %v1335_v25  ;;  %1199 = vmatprep.subr.mxu1 %v1128_v36 }
  0xf5   :  { %1183 = vmatprep.mubr.msk.f32.mxu1 %vm47_vm0, %v1312_v18  ;;  %1196 = vmatprep.mubr.msk.f32.mxu0 %vm47_vm0, %v1326_v22 }
  0xf7   :  { %1197 = vmatmul.mubr.msk.f32.gmra.mxu0 %vm47_vm0, %v1335_v25 }
  0xf8   :  { %1184 = vmatmul.mubr.msk.f32.vlgmr.msra.gmra.mxu1 %vm47_vm0, %v1321_v21 }
  0xf9   :  { %1200 = vmatpush3.msra.mxu1 %v1128_v36  ;;  %1186 = vmatprep.mubr.msk.f32.mxu1 %vm47_vm0, %v1326_v22 }
  0xfa   :  { %1201 = vmatprep.subr.mxu1 %v232_v37 }
  0xfb   :  { %1202 = vmatpush3.msra.mxu1 %v232_v37 }
  0xfc   :  { %1187 = vmatmul.mubr.msk.f32.gmra.mxu1 %vm47_vm0, %v1335_v25 }
  0xfd   :  { %1203 = vmatprep.mubr.msk.f32.mxu1 %vm47_vm0, %v1312_v18 }
 0x100   :  { %1204 = vmatmul.mubr.msk.f32.vlgmr.msra.gmra.mxu1 %vm47_vm0, %v1321_v21 }
 0x101   :  { %1206 = vmatprep.mubr.msk.f32.mxu1 %vm47_vm0, %v1326_v22 }
 0x104   :  { %1207 = vmatmul.mubr.msk.f32.gmra.mxu1 %vm47_vm0, %v1335_v25 }
 0x198   :  { %v1135_v38 = vpop.f32.mrf.mxu1 }
 0x199   :  { %939 = vst.msk [vmem:[#allocation5 + $0x8] sm:$0xff] %vm937_vm1, %v1135_v38 }
 0x19a   :  { %v323_v39 = vpop.f32.mrf.mxu1 }
 0x19b   :  { %938 = vst.msk [vmem:[#allocation5] sm:$0xff] %vm937_vm1, %v323_v39 }
 0x19c   :  { %v1138_v40 = vpop.f32.mrf.mxu1 }
 0x19d   :  { %941 = vst.msk [vmem:[#allocation5 + $0x18] sm:$0xff] %vm937_vm1, %v1138_v40 }
 0x19e   :  { %v333_v41 = vpop.f32.mrf.mxu1 }
 0x19f   :  { %940 = vst.msk [vmem:[#allocation5 + $0x10] sm:$0xff] %vm937_vm1, %v333_v41 }
 0x1a0   :  { %v1145_v42 = vpop.f32.mrf.mxu1 }
 0x1a1   :  { %943 = vst.msk [vmem:[#allocation5 + $0x28] sm:$0xff] %vm937_vm1, %v1145_v42 }
 0x1a2   :  { %v408_v43 = vpop.f32.mrf.mxu1 }
 0x1a3   :  { %942 = vst.msk [vmem:[#allocation5 + $0x20] sm:$0xff] %vm937_vm1, %v408_v43 }
 0x1a4   :  { %v1148_v44 = vpop.f32.mrf.mxu1 }
 0x1a5   :  { %945 = vst.msk [vmem:[#allocation5 + $0x38] sm:$0xff] %vm937_vm1, %v1148_v44 }
 0x1a6   :  { %v418_v45 = vpop.f32.mrf.mxu1 }
 0x1a7   :  { %944 = vst.msk [vmem:[#allocation5 + $0x30] sm:$0xff] %vm937_vm1, %v418_v45 }
 0x1a8   :  { %v1155_v46 = vpop.f32.mrf.mxu1 }
 0x1a9   :  { %947 = vst.msk [vmem:[#allocation5 + $0x48] sm:$0xff] %vm937_vm1, %v1155_v46 }
 0x1aa   :  { %v493_v47 = vpop.f32.mrf.mxu1  ;;  %v1175_v48 = vpop.f32.mrf.mxu0 }
 0x1ab   :  { %946 = vst.msk [vmem:[#allocation5 + $0x40] sm:$0xff] %vm937_vm1, %v493_v47  ;;  %955 = vst.msk [vmem:[#allocation5 + $0x88] sm:$0xff] %vm937_vm1, %v1175_v48 }
 0x1ac   :  { %v1158_v49 = vpop.f32.mrf.mxu1  ;;  %v663_v50 = vpop.f32.mrf.mxu0 }
 0x1ad   :  { %949 = vst.msk [vmem:[#allocation5 + $0x58] sm:$0xff] %vm937_vm1, %v1158_v49  ;;  %954 = vst.msk [vmem:[#allocation5 + $0x80] sm:$0xff] %vm937_vm1, %v663_v50 }
 0x1ae   :  { %v503_v51 = vpop.f32.mrf.mxu1 }
 0x1af   :  { %948 = vst.msk [vmem:[#allocation5 + $0x50] sm:$0xff] %vm937_vm1, %v503_v51  ;;  %v1178_v52 = vpop.f32.mrf.mxu0 }
 0x1b0   :  { %v1165_v53 = vpop.f32.mrf.mxu1  ;;  %957 = vst.msk [vmem:[#allocation5 + $0x98] sm:$0xff] %vm937_vm1, %v1178_v52 }
 0x1b1   :  { %951 = vst.msk [vmem:[#allocation5 + $0x68] sm:$0xff] %vm937_vm1, %v1165_v53  ;;  %v673_v54 = vpop.f32.mrf.mxu0 }
 0x1b2   :  { %v578_v55 = vpop.f32.mrf.mxu1  ;;  %956 = vst.msk [vmem:[#allocation5 + $0x90] sm:$0xff] %vm937_vm1, %v673_v54 }
 0x1b3   :  { %950 = vst.msk [vmem:[#allocation5 + $0x60] sm:$0xff] %vm937_vm1, %v578_v55  ;;  %v1195_v56 = vpop.f32.mrf.mxu0 }
 0x1b4   :  { %v1168_v57 = vpop.f32.mrf.mxu1  ;;  %963 = vst.msk [vmem:[#allocation5 + $0xc8] sm:$0xff] %vm937_vm1, %v1195_v56 }
 0x1b5   :  { %953 = vst.msk [vmem:[#allocation5 + $0x78] sm:$0xff] %vm937_vm1, %v1168_v57  ;;  %v833_v58 = vpop.f32.mrf.mxu0 }
 0x1b6   :  { %v588_v59 = vpop.f32.mrf.mxu1  ;;  %962 = vst.msk [vmem:[#allocation5 + $0xc0] sm:$0xff] %vm937_vm1, %v833_v58 }
 0x1b7   :  { %952 = vst.msk [vmem:[#allocation5 + $0x70] sm:$0xff] %vm937_vm1, %v588_v59  ;;  %v1198_v60 = vpop.f32.mrf.mxu0 }
 0x1b8   :  { %v1185_v61 = vpop.f32.mrf.mxu1  ;;  %965 = vst.msk [vmem:[#allocation5 + $0xd8] sm:$0xff] %vm937_vm1, %v1198_v60 }
 0x1b9   :  { %959 = vst.msk [vmem:[#allocation5 + $0xa8] sm:$0xff] %vm937_vm1, %v1185_v61  ;;  %v843_v62 = vpop.f32.mrf.mxu0 }
 0x1ba   :  { %v748_v63 = vpop.f32.mrf.mxu1  ;;  %964 = vst.msk [vmem:[#allocation5 + $0xd0] sm:$0xff] %vm937_vm1, %v843_v62 }
 0x1bb   :  { %958 = vst.msk [vmem:[#allocation5 + $0xa0] sm:$0xff] %vm937_vm1, %v748_v63 }
 0x1bc   :  { %v1188_v0 = vpop.f32.mrf.mxu1 }
 0x1bd   :  { %961 = vst.msk [vmem:[#allocation5 + $0xb8] sm:$0xff] %vm937_vm1, %v1188_v0 }
 0x1be   :  { %v758_v1 = vpop.f32.mrf.mxu1 }
 0x1bf   :  { %960 = vst.msk [vmem:[#allocation5 + $0xb0] sm:$0xff] %vm937_vm1, %v758_v1 }
 0x1c0   :  { %v1205_v2 = vpop.f32.mrf.mxu1 }
 0x1c1   :  { %967 = vst.msk [vmem:[#allocation5 + $0xe8] sm:$0xff] %vm937_vm1, %v1205_v2 }
 0x1c2   :  { %v918_v3 = vpop.f32.mrf.mxu1 }
 0x1c3   :  { %966 = vst.msk [vmem:[#allocation5 + $0xe0] sm:$0xff] %vm937_vm1, %v918_v3 }
 0x1c4   :  { %v1208_v4 = vpop.f32.mrf.mxu1 }
 0x1c5   :  { %969 = vst.msk [vmem:[#allocation5 + $0xf8] sm:$0xff] %vm937_vm1, %v1208_v4 }
 0x1c6   :  { %v928_v5 = vpop.f32.mrf.mxu1 }
 0x1c7   :  { %968 = vst.msk [vmem:[#allocation5 + $0xf0] sm:$0xff] %vm937_vm1, %v928_v5 }
 0x1c8   :  { %1244 = shalt.err (!%p1241_p9)
}
 0x1c9   :  { %981 = dma.vmem_to_hbm [thread:$0]  %s976_s29, 4096, %s1434_s3, [#allocation4], %s1258_s15, %s1258_s15, %s1259_s16  }
 0x1ca   :  { %1255 = dma.done.wait [#allocation4], 4096  }
 0x1cb   :  { %1256 = vsyncadd [#allocation4], 4294963200 }
 0x1cc   :  { %985 = vsyncpa [#allocation3], 1 }
 0x1cd   :  { %986 = vsyncpa [#allocation4], 1 }

</bundles_post_ra>
